<compile_context>
chip_gen: v5e
topology: v5e:2x2
jax: 0.10.0
libtpu: 0.0.40
codegen_flags: <defaults>
</compile_context>

<pallas_src>
import jax
import jax.numpy as jnp
from jax.experimental import pallas as pl
from jax.experimental.pallas import tpu as pltpu


def _round_up(x, n):
    return ((x + n - 1) // n) * n


def _make_kernel(n_hidden, compute_dtype):
    """Fused MLP + heads kernel for `n_hidden` hidden Linear+ReLU layers."""

    def kernel(x_ref, *refs):
        # refs layout: [W1, b1, ..., Wn, bn, W_heads, b_heads, out_ref]
        out_ref = refs[-1]
        h = x_ref[...]  # already compute_dtype (bf16) in the wrapper
        # TODO(synk): dropout (training mode) not implemented; eval-mode identity.
        for k in range(n_hidden):
            w = refs[2 * k][...]
            b = refs[2 * k + 1][...]  # f32 bias
            acc = jnp.dot(h, w, preferred_element_type=jnp.float32) + b
            h = jnp.maximum(acc, 0.0).astype(compute_dtype)
        w_heads = refs[2 * n_hidden][...]
        b_heads = refs[2 * n_hidden + 1][...]
        out_ref[...] = (
            jnp.dot(h, w_heads, preferred_element_type=jnp.float32) + b_heads
        ).astype(out_ref.dtype)

    return kernel


def span_detection_decoder_forward(
    x_d,
    span_indices,
    seq_lengths,
    params,
    *,
    row_tile=256,
    compute_dtype=jnp.bfloat16,
    lane=128,
):
    """Pallas implementation of SpanDetectionDecoder.forward (eval mode).

    Args:
      x_d: (batch, num_spans, span_embedding_dim) float32 span embeddings.
      span_indices: (num_spans, 2) int32 start/end indices.
      seq_lengths: (batch,) int32 sequence lengths.
      params: dict with 'hidden' = [(W, b), ...] (W: (in, out), b: (1, out)),
              'heads' = (W_heads, b_heads); column 0 = existence head, 1: = labels.
      row_tile: span rows per grid step (clamped to the problem size).
      compute_dtype: matmul operand dtype (bf16 on v6e/v7x MXU; accumulation f32).

    Returns:
      existence_logits: (batch, num_spans, 1) float32
      label_logits:     (batch, num_spans, num_labels) float32
      valid_mask:       (batch, num_spans) bool   (end <= seq_length, matching
                        the PyTorch `if end > seq_length: continue` filter)
      seq_lengths:      passed through unchanged.
    """
    batch, num_spans, in_dim = x_d.shape
    hidden = params["hidden"]
    w_heads, b_heads = params["heads"]
    out_width = w_heads.shape[1]  # 1 + num_labels

    m = batch * num_spans
    # Effective row tile: large enough to feed the MXU, but never larger than
    # the (sublane-rounded) problem, so the toy case collapses to grid=(1,).
    row_tile = min(row_tile, _round_up(m, 8))
    m_pad = _round_up(m, row_tile)

    # Lane-dense padding of every feature dimension.
    in_pad = _round_up(in_dim, lane)
    out_pad = _round_up(out_width, lane)

    x_flat = x_d.reshape(m, in_dim).astype(compute_dtype)
    x_flat = jnp.pad(x_flat, ((0, m_pad - m), (0, in_pad - in_dim)))

    # Pad + cast weights (zero padding is exact — see header comment).
    flat_params = []
    prev_pad = in_pad
    for w, b in hidden:
        k_dim, n_dim = w.shape
        n_p = _round_up(n_dim, lane)
        flat_params.append(
            jnp.pad(w, ((0, prev_pad - k_dim), (0, n_p - n_dim))).astype(compute_dtype)
        )
        flat_params.append(
            jnp.pad(b, ((0, 0), (0, n_p - n_dim))).astype(jnp.float32)
        )
        prev_pad = n_p
    flat_params.append(
        jnp.pad(
            w_heads, ((0, prev_pad - w_heads.shape[0]), (0, out_pad - out_width))
        ).astype(compute_dtype)
    )
    flat_params.append(
        jnp.pad(b_heads, ((0, 0), (0, out_pad - out_width))).astype(jnp.float32)
    )

    n_hidden = len(hidden)
    kernel = _make_kernel(n_hidden, compute_dtype)

    # BlockSpecs: tile over rows; weights/biases are full-array, grid-invariant
    # blocks (same block index every step => fetched once by the pipeline).
    # NOTE: pipeline_mode=pl.Buffered(1) would halve their VMEM footprint;
    # kept at the portable default here.
    in_specs = [pl.BlockSpec((row_tile, in_pad), lambda i: (i, 0))]
    for p in flat_params:
        in_specs.append(pl.BlockSpec(p.shape, lambda i: (0, 0)))
    out_specs = pl.BlockSpec((row_tile, out_pad), lambda i: (i, 0))

    # Cost estimate (helps XLA schedule surrounding ops around the custom call).
    flops = 0
    for k in range(n_hidden):
        w_p = flat_params[2 * k]
        flops += 2 * m_pad * w_p.shape[0] * w_p.shape[1]
    w_h_p = flat_params[2 * n_hidden]
    flops += 2 * m_pad * w_h_p.shape[0] * w_h_p.shape[1]
    bytes_accessed = (
        int(x_flat.size) * x_flat.dtype.itemsize
        + sum(int(p.size) * p.dtype.itemsize for p in flat_params)
        + m_pad * out_pad * 4
    )
    cost = pl.CostEstimate(
        flops=int(flops), transcendentals=0, bytes_accessed=int(bytes_accessed)
    )

    # Explicit VMEM budget: double-buffered x/out tiles + (double-buffered)
    # weights, with 2x headroom, clamped well under v7x's 64 MiB per-TC VMEM.
    op_size = jnp.dtype(compute_dtype).itemsize
    vmem_est = (
        2 * row_tile * in_pad * op_size
        + 2 * row_tile * out_pad * 4
        + 2 * sum(int(p.size) * p.dtype.itemsize for p in flat_params)
    )
    vmem_limit = int(min(max(2 * vmem_est, 4 << 20), 48 << 20))

    fused = pl.pallas_call(
        kernel,
        out_shape=jax.ShapeDtypeStruct((m_pad, out_pad), jnp.float32),
        grid_spec=pltpu.PrefetchScalarGridSpec(
            num_scalar_prefetch=0,
            grid=(m_pad // row_tile,),
            in_specs=in_specs,
            out_specs=out_specs,
        ),
        compiler_params=pltpu.CompilerParams(
            dimension_semantics=("parallel",),
            vmem_limit_bytes=vmem_limit,
        ),
        cost_estimate=cost,
    )(x_flat, *flat_params)

    fused = fused[:m, :out_width].reshape(batch, num_spans, out_width)
    existence_logits = fused[:, :, :1]
    label_logits = fused[:, :, 1:]

    # Out-of-bound span filtering: PyTorch skips spans with end > seq_length,
    # so valid <=> end <= seq_length.
    ends = span_indices[:, 1]  # (num_spans,)
    valid_mask = ends[None, :] <= seq_lengths[:, None]  # (batch, num_spans)

    return existence_logits, label_logits, valid_mask, seq_lengths


def _init_params(key, span_embedding_dim, mlp_dim, mlp_layers, num_labels):
    """Deterministic synthetic parameter init (PyTorch-Linear shaped)."""
    hidden = []
    in_dim = span_embedding_dim
    for _ in range(mlp_layers - 1):
        key, k_w, k_b = jax.random.split(key, 3)
        w = jax.random.normal(k_w, (in_dim, mlp_dim), jnp.float32) * 0.05
        b = jax.random.normal(k_b, (1, mlp_dim), jnp.float32) * 0.05
        hidden.append((w, b))
        in_dim = mlp_dim
    key, k_we, k_be, k_wl, k_bl = jax.random.split(key, 5)
    w_exist = jax.random.normal(k_we, (in_dim, 1), jnp.float32) * 0.05
    b_exist = jax.random.normal(k_be, (1, 1), jnp.float32) * 0.05
    w_label = jax.random.normal(k_wl, (in_dim, num_labels), jnp.float32) * 0.05
    b_label = jax.random.normal(k_bl, (1, num_labels), jnp.float32) * 0.05
    # Fuse the two heads into one lane-dense matmul: column 0 = existence.
    w_heads = jnp.concatenate([w_exist, w_label], axis=1)
    b_heads = jnp.concatenate([b_exist, b_label], axis=1)
    return {"hidden": hidden, "heads": (w_heads, b_heads)}


def _reference(x_d, params, compute_dtype):
    """Pure-JAX reference mirroring the kernel's dtypes (for sanity check)."""
    h = x_d.astype(compute_dtype)
    for w, b in params["hidden"]:
        acc = (
            jnp.dot(h, w.astype(compute_dtype), preferred_element_type=jnp.float32)
            + b[0]
        )
        h = jnp.maximum(acc, 0.0).astype(compute_dtype)
    w_heads, b_heads = params["heads"]
    out = (
        jnp.dot(h, w_heads.astype(compute_dtype), preferred_element_type=jnp.float32)
        + b_heads[0]
    )
    return out[..., :1], out[..., 1:]


if __name__ == "__main__":
    key = jax.random.PRNGKey(0)

    batch = 2
    num_spans = 8
    span_embedding_dim = 32
    mlp_dim = 32
    mlp_layers = 2          # 1 hidden Linear+ReLU, then the two logit heads
    num_labels = 8

    key, k_x, k_len = jax.random.split(key, 3)
    x_d = jax.random.normal(
        k_x, (batch, num_spans, span_embedding_dim), jnp.float32
    )
    # span_indices: (num_spans, 2) start/end pairs over a length-4 sequence.
    span_indices = jnp.array(
        [[s, e] for s in range(4) for e in range(s + 1, s + 3)][:num_spans],
        dtype=jnp.int32,
    )
    seq_lengths = jnp.array([4, 3], dtype=jnp.int32)

    params = _init_params(
        key, span_embedding_dim, mlp_dim, mlp_layers, num_labels
    )

    existence, labels, mask, out_lens = span_detection_decoder_forward(
        x_d, span_indices, seq_lengths, params
    )
    jax.block_until_ready((existence, labels, mask, out_lens))

    # Sanity check against a dtype-matched pure-JAX reference.
    ref_exist, ref_label = _reference(x_d, params, jnp.bfloat16)
    assert existence.shape == (batch, num_spans, 1)
    assert labels.shape == (batch, num_spans, num_labels)
    assert mask.shape == (batch, num_spans)
    assert jnp.allclose(existence, ref_exist, atol=1e-3, rtol=1e-3)
    assert jnp.allclose(labels, ref_label, atol=1e-3, rtol=1e-3)
    assert bool(jnp.all(out_lens == seq_lengths))

    print("KERNEL_OK")
</pallas_src>

<mosaic_0001>
module attributes {stable_mosaic.version = 11 : i64} {
  func.func @kernel(%arg0: i32, %arg1: memref<16x128xbf16, #tpu.memory_space<vmem>>, %arg2: memref<128x128xbf16, #tpu.memory_space<vmem>>, %arg3: memref<1x128xf32, #tpu.memory_space<vmem>>, %arg4: memref<128x128xbf16, #tpu.memory_space<vmem>>, %arg5: memref<1x128xf32, #tpu.memory_space<vmem>>, %arg6: memref<16x128xf32, #tpu.memory_space<vmem>>) attributes {dimension_semantics = [#tpu.dimension_semantics<parallel>], iteration_bounds = array<i64: 1>, scalar_prefetch = 0 : i64, scratch_operands = 0 : i64, tpu.core_type = #tpu.core_type<tc>, window_params = [{transform_indices = @transform_0, window_bounds = array<i64: 16, 128>}, {pipeline_mode = #tpu.pipeline_mode<synchronous>, transform_indices = @transform_1, window_bounds = array<i64: 128, 128>}, {pipeline_mode = #tpu.pipeline_mode<synchronous>, transform_indices = @transform_2, window_bounds = array<i64: 1, 128>}, {pipeline_mode = #tpu.pipeline_mode<synchronous>, transform_indices = @transform_3, window_bounds = array<i64: 128, 128>}, {pipeline_mode = #tpu.pipeline_mode<synchronous>, transform_indices = @transform_4, window_bounds = array<i64: 1, 128>}, {transform_indices = @transform_5, window_bounds = array<i64: 16, 128>}]} {
    %c0 = arith.constant 0 : index
    %c0_0 = arith.constant 0 : index
    %0 = vector.load %arg1[%c0, %c0_0] : memref<16x128xbf16, #tpu.memory_space<vmem>>, vector<16x128xbf16>
    %c0_1 = arith.constant 0 : index
    %c0_2 = arith.constant 0 : index
    %1 = vector.load %arg2[%c0_1, %c0_2] : memref<128x128xbf16, #tpu.memory_space<vmem>>, vector<128x128xbf16>
    %c0_3 = arith.constant 0 : index
    %c0_4 = arith.constant 0 : index
    %2 = vector.load %arg3[%c0_3, %c0_4] : memref<1x128xf32, #tpu.memory_space<vmem>>, vector<1x128xf32>
    %cst = arith.constant dense<0.000000e+00> : vector<16x128xf32>
    %3 = tpu.matmul %0, %1, %cst {dimension_numbers = #tpu.dot_dimension_numbers<[1], [0], [0], [1], [0, 0, 1, 1], [], []>} : vector<16x128xbf16>, vector<128x128xbf16>, vector<16x128xf32> -> vector<16x128xf32>
    %4 = vector.broadcast %2 : vector<1x128xf32> to vector<16x128xf32>
    %5 = arith.addf %3, %4 : vector<16x128xf32>
    %cst_5 = arith.constant 0.000000e+00 : f32
    %6 = vector.broadcast %cst_5 : f32 to vector<16x128xf32>
    %7 = arith.maximumf %5, %6 : vector<16x128xf32>
    %8 = arith.truncf %7 : vector<16x128xf32> to vector<16x128xbf16>
    %c0_6 = arith.constant 0 : index
    %c0_7 = arith.constant 0 : index
    %9 = vector.load %arg4[%c0_6, %c0_7] : memref<128x128xbf16, #tpu.memory_space<vmem>>, vector<128x128xbf16>
    %c0_8 = arith.constant 0 : index
    %c0_9 = arith.constant 0 : index
    %10 = vector.load %arg5[%c0_8, %c0_9] : memref<1x128xf32, #tpu.memory_space<vmem>>, vector<1x128xf32>
    %cst_10 = arith.constant dense<0.000000e+00> : vector<16x128xf32>
    %11 = tpu.matmul %8, %9, %cst_10 {dimension_numbers = #tpu.dot_dimension_numbers<[1], [0], [0], [1], [0, 0, 1, 1], [], []>} : vector<16x128xbf16>, vector<128x128xbf16>, vector<16x128xf32> -> vector<16x128xf32>
    %12 = vector.broadcast %10 : vector<1x128xf32> to vector<16x128xf32>
    %13 = arith.addf %11, %12 : vector<16x128xf32>
    %c0_11 = arith.constant 0 : index
    %c0_12 = arith.constant 0 : index
    %14 = vector.load %arg6[%c0_11, %c0_12] : memref<16x128xf32, #tpu.memory_space<vmem>>, vector<16x128xf32>
    tpu.vector_store %arg6[%c0_11, %c0_12], %13 {strides = array<i32>} : memref<16x128xf32, #tpu.memory_space<vmem>>, vector<16x128xf32>,
    return
  }
  func.func @transform_0(%arg0: i32) -> (i32, i32) {
    %c0_i32 = arith.constant 0 : i32
    %c0_i32_0 = arith.constant 0 : i32
    return %arg0, %c0_i32 : i32, i32
  }
  func.func @transform_1(%arg0: i32) -> (i32, i32) {
    %c0_i32 = arith.constant 0 : i32
    %c0_i32_0 = arith.constant 0 : i32
    %c0_i32_1 = arith.constant 0 : i32
    return %c0_i32, %c0_i32_0 : i32, i32
  }
  func.func @transform_2(%arg0: i32) -> (i32, i32) {
    %c0_i32 = arith.constant 0 : i32
    %c0_i32_0 = arith.constant 0 : i32
    %c0_i32_1 = arith.constant 0 : i32
    return %c0_i32, %c0_i32_0 : i32, i32
  }
  func.func @transform_3(%arg0: i32) -> (i32, i32) {
    %c0_i32 = arith.constant 0 : i32
    %c0_i32_0 = arith.constant 0 : i32
    %c0_i32_1 = arith.constant 0 : i32
    return %c0_i32, %c0_i32_0 : i32, i32
  }
  func.func @transform_4(%arg0: i32) -> (i32, i32) {
    %c0_i32 = arith.constant 0 : i32
    %c0_i32_0 = arith.constant 0 : i32
    %c0_i32_1 = arith.constant 0 : i32
    return %c0_i32, %c0_i32_0 : i32, i32
  }
  func.func @transform_5(%arg0: i32) -> (i32, i32) {
    %c0_i32 = arith.constant 0 : i32
    %c0_i32_0 = arith.constant 0 : i32
    return %arg0, %c0_i32 : i32, i32
  }
}

</mosaic_0001>

<bundles_post_ra>
// kernel: tpu_custom_call.1
= control target key start
LH: loop header
LB: loop body
LE: loop exit
PB: predicated region body
PF: predicated region fallthrough
CT: control target
= control target key end

     0   :  { %10 = vsyncpa [#allocation3], 0  ;;  %s518_s0 = inlined_call_operand.hbm [shape: bf16[16,128], index: 0, kind: input, shape index: {}]   ;;  %s519_s1 = inlined_call_operand.hbm [shape: bf16[128,128], index: 1, kind: input, shape index: {}]   ;;  %s520_s2 = inlined_call_operand.vmem [shape: f32[1,128], index: 2, kind: input, shape index: {}]   ;;  %s521_s3 = inlined_call_operand.hbm [shape: bf16[128,128], index: 3, kind: input, shape index: {}]   ;;  %s522_s4 = inlined_call_operand.vmem [shape: f32[1,128], index: 4, kind: input, shape index: {}]   ;;  %s523_s5 = inlined_call_operand.hbm [shape: f32[16,128], index: 5, kind: output, shape index: {}]  }
   0x1   :  { %11 = vsyncpa [#allocation6], 0 }
   0x2   :  { %12 = vsyncpa [#allocation4], 0  ;;  %s30_s20 = sshll.u32 %s519_s1, 4  ;;  %s462_s21 = smov [#allocation5]   ;;  %s31_s20 = int_to_ptr.hbm [resolvable:$true] %s30_s20 }
   0x3   :  { %s32_s22 = sshll.u32 %s462_s21, 4  ;;  %s17_s25 = sshll.u32 %s518_s0, 4  ;;  %s33_s22 = int_to_ptr.vmem [resolvable:$true] %s32_s22  ;;  %s18_s25 = int_to_ptr.hbm [resolvable:$true] %s17_s25 }
   0x4   :  { %s463_s26 = smov 64   ;;  %s464_s27 = smov 4  }
   0x5   :  { %38 = dma.hbm_to_vmem [thread:$0]  %s31_s20, 1024, %s33_s22, [#allocation6], %s463_s26, %s463_s26, %s464_s27  }
   0x6   :  { %s465_s28 = smov [#allocation2]   ;;  %s45_s7 = sshll.u32 %s521_s3, 4  ;;  %s46_s7 = int_to_ptr.hbm [resolvable:$true] %s45_s7 }
   0x7   :  { %s19_s29 = sshll.u32 %s465_s28, 4  ;;  %s466_s1 = smov [#allocation7]   ;;  %s20_s29 = int_to_ptr.vmem [resolvable:$true] %s19_s29 }
   0x8   :  { %25 = dma.hbm_to_vmem [thread:$0]  %s18_s25, 128, %s20_s29, [#allocation3], %s463_s26, %s463_s26, %s464_s27  }
   0x9   :  { %s47_s8 = sshll.u32 %s466_s1, 4  ;;  %s48_s8 = int_to_ptr.vmem [resolvable:$true] %s47_s8 }
   0xa   :  { %53 = dma.hbm_to_vmem [thread:$0]  %s46_s7, 1024, %s48_s8, [#allocation6], %s463_s26, %s463_s26, %s464_s27  }
   0xb   :  { %456 = dma.done.wait [#allocation3], 128  }
   0xc   :  { %457 = vsyncadd [#allocation3], 4294967168 }
   0xd   :  { %458 = dma.done.wait [#allocation6], 2048  }
   0xe   :  { %459 = vsyncadd [#allocation6], 4294965248  ;;  %v341_v0 = vld [vmem:[#allocation5 + $0x38] sm:$0xff]  ;;  %v340_v1 = vld [vmem:[#allocation5 + $0x30] sm:$0xff]  ;;  %s467_s11 = smov [#allocation8]   ;;  %s468_s15 = smov 128  }
   0xf   :  { %144 = vmatpush.bf16.msra.mxu0 %v341_v0  ;;  %v349_v2 = vld [vmem:[#allocation7 + $0x38] sm:$0xff]  ;;  %v348_v3 = vld [vmem:[#allocation7 + $0x30] sm:$0xff]  ;;  %v339_v4 = vld [vmem:[#allocation5 + $0x28] sm:$0xff]  ;;  %s249_s12 = sshll.u32 %s467_s11, 4  ;;  %s469_s16 = smov 8   ;;  %s250_s12 = int_to_ptr.vmem [resolvable:$true] %s249_s12 }
  0x10   :  { %229 = vmatpush.bf16.msra.mxu1 %v349_v2  ;;  %v347_v5 = vld [vmem:[#allocation7 + $0x28] sm:$0xff]  ;;  %v338_v6 = vld [vmem:[#allocation5 + $0x20] sm:$0xff]  ;;  %v337_v8 = vld [vmem:[#allocation5 + $0x18] sm:$0xff] }
  0x11   :  { %v346_v7 = vld [vmem:[#allocation7 + $0x20] sm:$0xff]  ;;  %v336_v9 = vld [vmem:[#allocation5 + $0x10] sm:$0xff]  ;;  %v335_v10 = vld [vmem:[#allocation5 + $0x8] sm:$0xff] }
  0x12   :  { %v334_v11 = vld [vmem:[#allocation5] sm:$0xff]  ;;  %v333_v12 = vld [vmem:[#allocation2] sm:$0xff]  ;;  %v344_v14 = vld [vmem:[#allocation7 + $0x10] sm:$0xff] }
  0x13   :  { %145 = vmatpush.bf16.msra.mxu0 %v340_v1  ;;  %v345_v13 = vld [vmem:[#allocation7 + $0x18] sm:$0xff]  ;;  %v343_v15 = vld [vmem:[#allocation7 + $0x8] sm:$0xff]  ;;  %v342_v16 = vld [vmem:[#allocation7] sm:$0xff] }
  0x14   :  { %230 = vmatpush.bf16.msra.mxu1 %v348_v3  ;;  %v358_v18 = vld [vmem:[%s520_s2] ss:$0 sm:$0xff]  ;;  %s251_s2 = sshll.u32 %s523_s5, 4  ;;  %s252_s2 = int_to_ptr.hbm [resolvable:$true] %s251_s2 }
  0x15   :  { %v359_v25 = vld [vmem:[%s522_s4] ss:$0 sm:$0xff] }
  0x17   :  { %146 = vmatpush.bf16.msra.mxu0 %v339_v4 }
  0x18   :  { %231 = vmatpush.bf16.msra.mxu1 %v347_v5 }
  0x1b   :  { %147 = vmatpush.bf16.msra.mxu0 %v338_v6 }
  0x1c   :  { %232 = vmatpush.bf16.msra.mxu1 %v346_v7 }
  0x1f   :  { %148 = vmatpush.bf16.msra.mxu0 %v337_v8 }
  0x20   :  { %233 = vmatpush.bf16.msra.mxu1 %v345_v13 }
  0x23   :  { %149 = vmatpush.bf16.msra.mxu0 %v336_v9 }
  0x24   :  { %234 = vmatpush.bf16.msra.mxu1 %v344_v14 }
  0x27   :  { %150 = vmatpush.bf16.msra.mxu0 %v335_v10 }
  0x28   :  { %235 = vmatpush.bf16.msra.mxu1 %v343_v15 }
  0x2b   :  { %151 = vmatpush.bf16.msra.mxu0 %v334_v11 }
  0x2c   :  { %236 = vmatpush.bf16.msra.mxu1 %v342_v16 }
  0x2e   :  { %152 = vmatmul.bf16.vlgmr.msra.gmra.mxu0 %v333_v12 }
  0xab   :  { %v153_v17 = vpop.f32.mrf.mxu0 }
  0xac   :  { %v154_v19 = vadd.f32 %v358_v18, %v153_v17 }
  0xae   :  { %v158_v22 = vmax.f32 %v154_v19, 0.0 }
  0xb3   :  { %v155_v20 = vpop.f32.mrf.mxu0 }
  0xb4   :  { %v156_v21 = vadd.f32 %v358_v18, %v155_v20 }
  0xb6   :  { %v159_v23 = vmax.f32 %v156_v21, 0.0 }
  0xb8   :  { %v160_v24 = vpack.c.bf16 %v159_v23, %v158_v22 }
  0xba   :  { %237 = vmatmul.bf16.vlgmr.msra.gmra.mxu1 %v160_v24 }
 0x137   :  { %v238_v26 = vpop.f32.mrf.mxu1 }
 0x138   :  { %v239_v27 = vadd.f32 %v359_v25, %v238_v26 }
 0x13a   :  { %243 = vst [vmem:[#allocation8] sm:$0xff] %v239_v27 }
 0x13f   :  { %v240_v28 = vpop.f32.mrf.mxu1 }
 0x140   :  { %v241_v29 = vadd.f32 %v359_v25, %v240_v28 }
 0x142   :  { %244 = vst [vmem:[#allocation8 + $0x8] sm:$0xff] %v241_v29 }
 0x143   :  { %257 = dma.vmem_to_hbm [thread:$0]  %s250_s12, 256, %s252_s2, [#allocation4], %s468_s15, %s468_s15, %s469_s16  }
 0x144   :  { %460 = dma.done.wait [#allocation4], 256  }
 0x145   :  { %461 = vsyncadd [#allocation4], 4294967040 }
 0x146   :  { %262 = vsyncpa [#allocation3], 1 }
 0x147   :  { %263 = vsyncpa [#allocation6], 1 }
 0x148   :  { %264 = vsyncpa [#allocation4], 1 }

</bundles_post_ra>
